<compile_context>
chip_gen: v7x
topology: tpu7x:2x2x1
jax: 0.10.0
libtpu: 0.0.40
codegen_flags: <defaults>
</compile_context>

<pallas_src>
import functools

import jax
import jax.numpy as jnp
from jax import lax
from jax.experimental import pallas as pl
from jax.experimental.pallas import tpu as pltpu

# Sized with headroom for v7x (64 MiB physical VMEM); far above what these tiles need.
VMEM_LIMIT = 48 * 1024 * 1024


def _round_up(x, m):
    return ((x + m - 1) // m) * m


def _choose_tiles(n):
    """Return (n_pad, tile_m, tile_k) for the node dimension."""
    if n <= 512:
        n_pad = _round_up(n, 16)          # bf16 sublane-friendly, single tile
        return n_pad, n_pad, n_pad
    tile_m, tile_k = 256, 512             # bf16 adj: (mult of 16, mult of 128)
    n_pad = _round_up(n, 512)
    return n_pad, tile_m, tile_k


# ----------------------------- Pallas kernels ------------------------------

def _xform_kernel(x_ref, wcat_ref, bcat_ref, agg_ref, selfp_ref, *, hidden, input_relu):
    """Per-layer dense transform on a row tile of nodes.
       y      = [relu?](x) @ [W_agg | W_lin] + [b_agg | b_lin]   (one fused MXU matmul)
       agg    = relu(y[:, :H])        -> bf16 (feeds the mem-bound adj matmul)
       selfp  = y[:, H:]              -> f32
    """
    x = x_ref[...]
    if input_relu:                     # inter-layer F.relu from the GNNStack loop
        x = jnp.maximum(x, 0.0)
    y = jnp.dot(x, wcat_ref[...], preferred_element_type=jnp.float32) + bcat_ref[...]
    agg_ref[...] = jnp.maximum(y[:, :hidden], 0.0).astype(agg_ref.dtype)
    selfp_ref[...] = y[:, hidden:]


def _aggregate_kernel(adj_ref, agg_ref, selfp_ref, o_ref, acc_ref):
    """neigh = adj @ agg accumulated over source chunks k; finalize with
       out = L2_normalize(relu(neigh + selfp))  (GraphSage update)."""
    k = pl.program_id(1)

    @pl.when(k == 0)
    def _():
        acc_ref[...] = selfp_ref[...]

    acc_ref[...] += jnp.dot(adj_ref[...], agg_ref[...],
                            preferred_element_type=jnp.float32)

    @pl.when(k == pl.num_programs(1) - 1)
    def _():
        out = jnp.maximum(acc_ref[...], 0.0)
        sq = jnp.sum(out * out, axis=-1, keepdims=True)
        # F.normalize(p=2, eps=1e-12): 1/max(||x||,1e-12) == rsqrt(max(||x||^2,1e-24))
        o_ref[...] = out * lax.rsqrt(jnp.maximum(sq, 1e-24))


def _post_mp_kernel(h_ref, w1_ref, b1_ref, w2_ref, b2_ref, o_ref):
    """GNNStack tail on a row tile: relu -> Linear -> (dropout=id) -> Linear(padded
       to 128 classes, pad bias=-1e30) -> log_softmax over the lane-dense axis."""
    h = jnp.maximum(h_ref[...], 0.0)
    h1 = jnp.dot(h, w1_ref[...], preferred_element_type=jnp.float32) + b1_ref[...]
    logits = jnp.dot(h1, w2_ref[...], preferred_element_type=jnp.float32) + b2_ref[...]
    m = jnp.max(logits, axis=-1, keepdims=True)
    z = logits - m
    lse = jnp.log(jnp.sum(jnp.exp(z), axis=-1, keepdims=True))
    o_ref[...] = z - lse


# --------------------------- pallas_call wrappers ---------------------------

def _layer_xform(x, wcat, bcat, hidden, input_relu, tile_m):
    n_pad, f = x.shape
    kern = functools.partial(_xform_kernel, hidden=hidden, input_relu=input_relu)
    return pl.pallas_call(
        kern,
        out_shape=(jax.ShapeDtypeStruct((n_pad, hidden), jnp.bfloat16),
                   jax.ShapeDtypeStruct((n_pad, hidden), jnp.float32)),
        grid_spec=pltpu.PrefetchScalarGridSpec(
            num_scalar_prefetch=0,
            grid=(n_pad // tile_m,),
            in_specs=[pl.BlockSpec((tile_m, f), lambda i: (i, 0)),
                      pl.BlockSpec((f, 2 * hidden), lambda i: (0, 0)),
                      pl.BlockSpec((1, 2 * hidden), lambda i: (0, 0))],
            out_specs=[pl.BlockSpec((tile_m, hidden), lambda i: (i, 0)),
                       pl.BlockSpec((tile_m, hidden), lambda i: (i, 0))]),
        compiler_params=pltpu.CompilerParams(
            dimension_semantics=("parallel",),
            vmem_limit_bytes=VMEM_LIMIT),
    )(x, wcat, bcat)


def _layer_aggregate(adj, agg, selfp, tile_m, tile_k, hidden):
    n_pad = adj.shape[0]
    cost = pl.CostEstimate(
        flops=int(2 * n_pad * n_pad * hidden + 6 * n_pad * hidden),
        transcendentals=int(n_pad),
        bytes_accessed=int(adj.size * adj.dtype.itemsize
                           + agg.size * agg.dtype.itemsize
                           + selfp.size * 4 + n_pad * hidden * 4))
    return pl.pallas_call(
        _aggregate_kernel,
        out_shape=jax.ShapeDtypeStruct((n_pad, hidden), jnp.float32),
        grid_spec=pltpu.PrefetchScalarGridSpec(
            num_scalar_prefetch=0,
            grid=(n_pad // tile_m, n_pad // tile_k),
            in_specs=[pl.BlockSpec((tile_m, tile_k), lambda i, k: (i, k)),
                      pl.BlockSpec((tile_k, hidden), lambda i, k: (k, 0)),
                      pl.BlockSpec((tile_m, hidden), lambda i, k: (i, 0))],
            out_specs=pl.BlockSpec((tile_m, hidden), lambda i, k: (i, 0)),
            scratch_shapes=[pltpu.VMEM((tile_m, hidden), jnp.float32)]),
        compiler_params=pltpu.CompilerParams(
            dimension_semantics=("parallel", "arbitrary"),
            vmem_limit_bytes=VMEM_LIMIT),
        cost_estimate=cost,
    )(adj, agg, selfp)


def _post_mp(h, w1, b1, w2p, b2p, tile_m):
    n_pad, hidden = h.shape
    c_pad = w2p.shape[1]
    return pl.pallas_call(
        _post_mp_kernel,
        out_shape=jax.ShapeDtypeStruct((n_pad, c_pad), jnp.float32),
        grid_spec=pltpu.PrefetchScalarGridSpec(
            num_scalar_prefetch=0,
            grid=(n_pad // tile_m,),
            in_specs=[pl.BlockSpec((tile_m, hidden), lambda i: (i, 0)),
                      pl.BlockSpec((hidden, hidden), lambda i: (0, 0)),
                      pl.BlockSpec((1, hidden), lambda i: (0, 0)),
                      pl.BlockSpec((hidden, c_pad), lambda i: (0, 0)),
                      pl.BlockSpec((1, c_pad), lambda i: (0, 0))],
            out_specs=pl.BlockSpec((tile_m, c_pad), lambda i: (i, 0))),
        compiler_params=pltpu.CompilerParams(
            dimension_semantics=("parallel",),
            vmem_limit_bytes=VMEM_LIMIT),
    )(h, w1, b1, w2p, b2p)


# ----------------------------- model wrapper -------------------------------

def init_params(key, input_dim, hidden_dim, output_dim, num_layers):
    """Deterministic synthetic parameters (shapes match GNNStack/GraphSage __init__).
       Weights stored [in, out] (transposed vs. torch) so the kernel does x @ W + b."""
    def lin(k, fan_in, fan_out):
        kw, kb = jax.random.split(k)
        scale = 1.0 / jnp.sqrt(jnp.float32(fan_in))
        w = jax.random.uniform(kw, (fan_in, fan_out), jnp.float32, -scale, scale)
        b = jax.random.uniform(kb, (1, fan_out), jnp.float32, -scale, scale)
        return w, b

    keys = jax.random.split(key, 2 * num_layers + 2)
    layers = []
    dims = [input_dim] + [hidden_dim] * num_layers
    for li in range(num_layers):
        w_lin, b_lin = lin(keys[2 * li], dims[li], dims[li + 1])
        w_agg, b_agg = lin(keys[2 * li + 1], dims[li], dims[li + 1])
        layers.append(dict(
            w_lin=w_lin, b_lin=b_lin, w_agg=w_agg, b_agg=b_agg,
            # fused weights: one MXU pass computes both agg and self projections
            wcat=jnp.concatenate([w_agg, w_lin], axis=1),
            bcat=jnp.concatenate([b_agg, b_lin], axis=1)))
    w1, b1 = lin(keys[-2], hidden_dim, hidden_dim)
    w2, b2 = lin(keys[-1], hidden_dim, output_dim)
    c_pad = _round_up(max(output_dim, 128), 128)          # lane-dense class axis
    w2p = jnp.zeros((hidden_dim, c_pad), jnp.float32).at[:, :output_dim].set(w2)
    b2p = jnp.full((1, c_pad), -1e30, jnp.float32).at[:, :output_dim].set(b2)
    post = dict(w1=w1, b1=b1, w2=w2, b2=b2, w2p=w2p, b2p=b2p, num_classes=output_dim)
    return dict(layers=layers, post_mp=post)


def build_mean_adj(edge_index, num_nodes, n_pad):
    """Dense row-normalized adjacency (bf16): adj[t, s] = 1/in_deg(t) for edge s->t,
       zero-padded to n_pad x n_pad."""
    src, dst = edge_index[0], edge_index[1]
    adj = jnp.zeros((n_pad, n_pad), jnp.float32).at[dst, src].add(1.0)
    deg = jnp.sum(adj, axis=1, keepdims=True)
    adj = adj * jnp.where(deg > 0, 1.0 / deg, 0.0)
    return adj.astype(jnp.bfloat16)


def gnn_stack_forward(x, edge_index, params):
    """GNNStack.forward for model_type='GraphSage', task='node', eval mode."""
    n, f_in = x.shape
    hidden = params["layers"][0]["w_lin"].shape[1]
    n_pad, tile_m, tile_k = _choose_tiles(n)

    adj = build_mean_adj(edge_index, n, n_pad)
    h = jnp.zeros((n_pad, f_in), jnp.float32).at[:n].set(x.astype(jnp.float32))

    for li, p in enumerate(params["layers"]):
        agg, selfp = _layer_xform(h, p["wcat"], p["bcat"], hidden,
                                  input_relu=(li > 0), tile_m=tile_m)
        h = _layer_aggregate(adj, agg, selfp, tile_m, tile_k, hidden)

    pm = params["post_mp"]
    logp = _post_mp(h, pm["w1"], pm["b1"], pm["w2p"], pm["b2p"], tile_m)
    return logp[:n, :pm["num_classes"]]


# pure-JAX f32 reference for validation
def gnn_stack_reference(x, edge_index, params):
    n = x.shape[0]
    src, dst = edge_index[0], edge_index[1]
    adj = jnp.zeros((n, n), jnp.float32).at[dst, src].add(1.0)
    deg = jnp.sum(adj, axis=1, keepdims=True)
    adj = adj * jnp.where(deg > 0, 1.0 / deg, 0.0)
    h = x.astype(jnp.float32)
    for li, p in enumerate(params["layers"]):
        if li > 0:
            h = jnp.maximum(h, 0.0)
        agg = jnp.maximum(h @ p["w_agg"] + p["b_agg"], 0.0)
        out = jnp.maximum(adj @ agg + (h @ p["w_lin"] + p["b_lin"]), 0.0)
        nrm = jnp.sqrt(jnp.sum(out * out, -1, keepdims=True))
        h = out / jnp.maximum(nrm, 1e-12)
    pm = params["post_mp"]
    h = jnp.maximum(h, 0.0)
    logits = (h @ pm["w1"] + pm["b1"]) @ pm["w2"] + pm["b2"]
    return jax.nn.log_softmax(logits, axis=1)


if __name__ == "__main__":
    # args: model_type='GraphSage', num_layers=2, dropout=0.0 (eval mode -> identity)
    N, E = 16, 48
    input_dim, hidden_dim, output_dim, num_layers = 8, 32, 4, 2

    key = jax.random.PRNGKey(0)
    k_x, k_e, k_p = jax.random.split(key, 3)
    x = jax.random.normal(k_x, (N, input_dim), jnp.float32)
    edge_index = jax.random.randint(k_e, (2, E), 0, N, jnp.int32)
    params = init_params(k_p, input_dim, hidden_dim, output_dim, num_layers)

    fwd = jax.jit(lambda xx, ee: gnn_stack_forward(xx, ee, params))
    out = jax.block_until_ready(fwd(x, edge_index))
    ref = jax.block_until_ready(gnn_stack_reference(x, edge_index, params))

    assert out.shape == (N, output_dim)
    assert bool(jnp.all(jnp.isfinite(out)))
    # tolerance widened because the adjacency matmul runs in bf16 (f32 accumulation)
    assert jnp.allclose(out, ref, rtol=5e-2, atol=5e-2), float(jnp.max(jnp.abs(out - ref)))
    print("KERNEL_OK")
</pallas_src>

<mosaic_0001>
module attributes {stable_mosaic.version = 11 : i64} {
  func.func private @main(%arg0: i32) attributes {dimension_semantics = [#tpu.dimension_semantics<core_parallel>], iteration_bounds = array<i64: 2>, tpu.core_type = #tpu.core_type<sc_scalar_subcore>, window_params = []} {
    return
  }
}

module attributes {stable_mosaic.version = 11 : i64} {
  func.func private @main(%arg0: i32) attributes {dimension_semantics = [#tpu.dimension_semantics<core_parallel>], iteration_bounds = array<i64: 2>, tpu.core_type = #tpu.core_type<sc_scalar_subcore>, window_params = []} {
    return
  }
}

module attributes {stable_mosaic.version = 11 : i64} {
  func.func @_xform_kernel(%arg0: i32, %arg1: memref<16x8xf32, #tpu.memory_space<vmem>>, %arg2: memref<8x64xf32, #tpu.memory_space<vmem>>, %arg3: memref<1x64xf32, #tpu.memory_space<vmem>>, %arg4: memref<16x32xbf16, #tpu.memory_space<vmem>>, %arg5: memref<16x32xf32, #tpu.memory_space<vmem>>) attributes {dimension_semantics = [#tpu.dimension_semantics<parallel>], iteration_bounds = array<i64: 1>, scalar_prefetch = 0 : i64, scratch_operands = 0 : i64, tpu.core_type = #tpu.core_type<tc>, window_params = [{transform_indices = @transform_0, window_bounds = array<i64: 16, 8>}, {pipeline_mode = #tpu.pipeline_mode<synchronous>, transform_indices = @transform_1, window_bounds = array<i64: 8, 64>}, {pipeline_mode = #tpu.pipeline_mode<synchronous>, transform_indices = @transform_2, window_bounds = array<i64: 1, 64>}, {transform_indices = @transform_3, window_bounds = array<i64: 16, 32>}, {transform_indices = @transform_4, window_bounds = array<i64: 16, 32>}]} {
    %c0 = arith.constant 0 : index
    %c0_0 = arith.constant 0 : index
    %0 = vector.load %arg1[%c0, %c0_0] : memref<16x8xf32, #tpu.memory_space<vmem>>, vector<16x8xf32>
    %c0_1 = arith.constant 0 : index
    %c0_2 = arith.constant 0 : index
    %1 = vector.load %arg2[%c0_1, %c0_2] : memref<8x64xf32, #tpu.memory_space<vmem>>, vector<8x64xf32>
    %cst = arith.constant dense<0.000000e+00> : vector<16x64xf32>
    %2 = tpu.matmul %0, %1, %cst {dimension_numbers = #tpu.dot_dimension_numbers<[1], [0], [0], [1], [0, 0, 1, 1], [], []>} : vector<16x8xf32>, vector<8x64xf32>, vector<16x64xf32> -> vector<16x64xf32>
    %c0_3 = arith.constant 0 : index
    %c0_4 = arith.constant 0 : index
    %3 = vector.load %arg3[%c0_3, %c0_4] : memref<1x64xf32, #tpu.memory_space<vmem>>, vector<1x64xf32>
    %4 = vector.broadcast %3 : vector<1x64xf32> to vector<16x64xf32>
    %5 = arith.addf %2, %4 : vector<16x64xf32>
    %6 = vector.extract_strided_slice %5 {offsets = [0, 0], sizes = [16, 32], strides = [1, 1]} : vector<16x64xf32> to vector<16x32xf32>
    %cst_5 = arith.constant 0.000000e+00 : f32
    %7 = vector.broadcast %cst_5 : f32 to vector<16x32xf32>
    %8 = arith.maximumf %6, %7 : vector<16x32xf32>
    %9 = arith.truncf %8 : vector<16x32xf32> to vector<16x32xbf16>
    %c0_6 = arith.constant 0 : index
    %c0_7 = arith.constant 0 : index
    %10 = vector.load %arg4[%c0_6, %c0_7] : memref<16x32xbf16, #tpu.memory_space<vmem>>, vector<16x32xbf16>
    tpu.vector_store %arg4[%c0_6, %c0_7], %9 {strides = array<i32>} : memref<16x32xbf16, #tpu.memory_space<vmem>>, vector<16x32xbf16>,
    %11 = vector.extract_strided_slice %5 {offsets = [0, 32], sizes = [16, 32], strides = [1, 1]} : vector<16x64xf32> to vector<16x32xf32>
    %c0_8 = arith.constant 0 : index
    %c0_9 = arith.constant 0 : index
    %12 = vector.load %arg5[%c0_8, %c0_9] : memref<16x32xf32, #tpu.memory_space<vmem>>, vector<16x32xf32>
    tpu.vector_store %arg5[%c0_8, %c0_9], %11 {strides = array<i32>} : memref<16x32xf32, #tpu.memory_space<vmem>>, vector<16x32xf32>,
    return
  }
  func.func @transform_0(%arg0: i32) -> (i32, i32) {
    %c0_i32 = arith.constant 0 : i32
    %c0_i32_0 = arith.constant 0 : i32
    return %arg0, %c0_i32 : i32, i32
  }
  func.func @transform_1(%arg0: i32) -> (i32, i32) {
    %c0_i32 = arith.constant 0 : i32
    %c0_i32_0 = arith.constant 0 : i32
    %c0_i32_1 = arith.constant 0 : i32
    return %c0_i32, %c0_i32_0 : i32, i32
  }
  func.func @transform_2(%arg0: i32) -> (i32, i32) {
    %c0_i32 = arith.constant 0 : i32
    %c0_i32_0 = arith.constant 0 : i32
    %c0_i32_1 = arith.constant 0 : i32
    return %c0_i32, %c0_i32_0 : i32, i32
  }
  func.func @transform_3(%arg0: i32) -> (i32, i32) {
    %c0_i32 = arith.constant 0 : i32
    %c0_i32_0 = arith.constant 0 : i32
    return %arg0, %c0_i32 : i32, i32
  }
  func.func @transform_4(%arg0: i32) -> (i32, i32) {
    %c0_i32 = arith.constant 0 : i32
    %c0_i32_0 = arith.constant 0 : i32
    return %arg0, %c0_i32 : i32, i32
  }
}

module attributes {stable_mosaic.version = 11 : i64} {
  func.func @_post_mp_kernel(%arg0: i32, %arg1: memref<16x32xf32, #tpu.memory_space<vmem>>, %arg2: memref<32x32xf32, #tpu.memory_space<vmem>>, %arg3: memref<1x32xf32, #tpu.memory_space<vmem>>, %arg4: memref<32x128xf32, #tpu.memory_space<vmem>>, %arg5: memref<1x128xf32, #tpu.memory_space<vmem>>, %arg6: memref<16x128xf32, #tpu.memory_space<vmem>>) attributes {dimension_semantics = [#tpu.dimension_semantics<parallel>], iteration_bounds = array<i64: 1>, scalar_prefetch = 0 : i64, scratch_operands = 0 : i64, tpu.core_type = #tpu.core_type<tc>, window_params = [{transform_indices = @transform_0, window_bounds = array<i64: 16, 32>}, {pipeline_mode = #tpu.pipeline_mode<synchronous>, transform_indices = @transform_1, window_bounds = array<i64: 32, 32>}, {pipeline_mode = #tpu.pipeline_mode<synchronous>, transform_indices = @transform_2, window_bounds = array<i64: 1, 32>}, {pipeline_mode = #tpu.pipeline_mode<synchronous>, transform_indices = @transform_3, window_bounds = array<i64: 32, 128>}, {pipeline_mode = #tpu.pipeline_mode<synchronous>, transform_indices = @transform_4, window_bounds = array<i64: 1, 128>}, {transform_indices = @transform_5, window_bounds = array<i64: 16, 128>}]} {
    %c0 = arith.constant 0 : index
    %c0_0 = arith.constant 0 : index
    %0 = vector.load %arg1[%c0, %c0_0] : memref<16x32xf32, #tpu.memory_space<vmem>>, vector<16x32xf32>
    %cst = arith.constant 0.000000e+00 : f32
    %1 = vector.broadcast %cst : f32 to vector<16x32xf32>
    %2 = arith.maximumf %0, %1 : vector<16x32xf32>
    %c0_1 = arith.constant 0 : index
    %c0_2 = arith.constant 0 : index
    %3 = vector.load %arg2[%c0_1, %c0_2] : memref<32x32xf32, #tpu.memory_space<vmem>>, vector<32x32xf32>
    %cst_3 = arith.constant dense<0.000000e+00> : vector<16x32xf32>
    %4 = tpu.matmul %2, %3, %cst_3 {dimension_numbers = #tpu.dot_dimension_numbers<[1], [0], [0], [1], [0, 0, 1, 1], [], []>} : vector<16x32xf32>, vector<32x32xf32>, vector<16x32xf32> -> vector<16x32xf32>
    %c0_4 = arith.constant 0 : index
    %c0_5 = arith.constant 0 : index
    %5 = vector.load %arg3[%c0_4, %c0_5] : memref<1x32xf32, #tpu.memory_space<vmem>>, vector<1x32xf32>
    %6 = vector.broadcast %5 : vector<1x32xf32> to vector<16x32xf32>
    %7 = arith.addf %4, %6 : vector<16x32xf32>
    %c0_6 = arith.constant 0 : index
    %c0_7 = arith.constant 0 : index
    %8 = vector.load %arg4[%c0_6, %c0_7] : memref<32x128xf32, #tpu.memory_space<vmem>>, vector<32x128xf32>
    %cst_8 = arith.constant dense<0.000000e+00> : vector<16x128xf32>
    %9 = tpu.matmul %7, %8, %cst_8 {dimension_numbers = #tpu.dot_dimension_numbers<[1], [0], [0], [1], [0, 0, 1, 1], [], []>} : vector<16x32xf32>, vector<32x128xf32>, vector<16x128xf32> -> vector<16x128xf32>
    %c0_9 = arith.constant 0 : index
    %c0_10 = arith.constant 0 : index
    %10 = vector.load %arg5[%c0_9, %c0_10] : memref<1x128xf32, #tpu.memory_space<vmem>>, vector<1x128xf32>
    %11 = vector.broadcast %10 : vector<1x128xf32> to vector<16x128xf32>
    %12 = arith.addf %9, %11 : vector<16x128xf32>
    %cst_11 = arith.constant dense<0xFF800000> : vector<16xf32>
    %13 = vector.multi_reduction <maximumf>, %12, %cst_11 [1] : vector<16x128xf32> to vector<16xf32>
    %14 = vector.shape_cast %13 : vector<16xf32> to vector<16x1xf32>
    %15 = vector.broadcast %14 : vector<16x1xf32> to vector<16x128xf32>
    %16 = arith.subf %12, %15 : vector<16x128xf32>
    %17 = math.exp %16 : vector<16x128xf32>
    %cst_12 = arith.constant dense<0.000000e+00> : vector<16xf32>
    %18 = vector.multi_reduction <add>, %17, %cst_12 [1] : vector<16x128xf32> to vector<16xf32>
    %19 = vector.shape_cast %18 : vector<16xf32> to vector<16x1xf32>
    %20 = math.log %19 : vector<16x1xf32>
    %21 = vector.broadcast %20 : vector<16x1xf32> to vector<16x128xf32>
    %22 = arith.subf %16, %21 : vector<16x128xf32>
    %c0_13 = arith.constant 0 : index
    %c0_14 = arith.constant 0 : index
    %23 = vector.load %arg6[%c0_13, %c0_14] : memref<16x128xf32, #tpu.memory_space<vmem>>, vector<16x128xf32>
    tpu.vector_store %arg6[%c0_13, %c0_14], %22 {strides = array<i32>} : memref<16x128xf32, #tpu.memory_space<vmem>>, vector<16x128xf32>,
    return
  }
  func.func @transform_0(%arg0: i32) -> (i32, i32) {
    %c0_i32 = arith.constant 0 : i32
    %c0_i32_0 = arith.constant 0 : i32
    return %arg0, %c0_i32 : i32, i32
  }
  func.func @transform_1(%arg0: i32) -> (i32, i32) {
    %c0_i32 = arith.constant 0 : i32
    %c0_i32_0 = arith.constant 0 : i32
    %c0_i32_1 = arith.constant 0 : i32
    return %c0_i32, %c0_i32_0 : i32, i32
  }
  func.func @transform_2(%arg0: i32) -> (i32, i32) {
    %c0_i32 = arith.constant 0 : i32
    %c0_i32_0 = arith.constant 0 : i32
    %c0_i32_1 = arith.constant 0 : i32
    return %c0_i32, %c0_i32_0 : i32, i32
  }
  func.func @transform_3(%arg0: i32) -> (i32, i32) {
    %c0_i32 = arith.constant 0 : i32
    %c0_i32_0 = arith.constant 0 : i32
    %c0_i32_1 = arith.constant 0 : i32
    return %c0_i32, %c0_i32_0 : i32, i32
  }
  func.func @transform_4(%arg0: i32) -> (i32, i32) {
    %c0_i32 = arith.constant 0 : i32
    %c0_i32_0 = arith.constant 0 : i32
    %c0_i32_1 = arith.constant 0 : i32
    return %c0_i32, %c0_i32_0 : i32, i32
  }
  func.func @transform_5(%arg0: i32) -> (i32, i32) {
    %c0_i32 = arith.constant 0 : i32
    %c0_i32_0 = arith.constant 0 : i32
    return %arg0, %c0_i32 : i32, i32
  }
}

module attributes {stable_mosaic.version = 11 : i64} {
  func.func @_aggregate_kernel(%arg0: i32, %arg1: i32, %arg2: memref<16x16xbf16, #tpu.memory_space<vmem>>, %arg3: memref<16x32xbf16, #tpu.memory_space<vmem>>, %arg4: memref<16x32xf32, #tpu.memory_space<vmem>>, %arg5: memref<16x32xf32, #tpu.memory_space<vmem>>, %arg6: memref<16x32xf32, #tpu.memory_space<vmem>>) attributes {dimension_semantics = [#tpu.dimension_semantics<parallel>, #tpu.dimension_semantics<arbitrary>], iteration_bounds = array<i64: 1, 1>, scalar_prefetch = 0 : i64, scratch_operands = 1 : i64, tpu.core_type = #tpu.core_type<tc>, window_params = [{transform_indices = @transform_0, window_bounds = array<i64: 16, 16>}, {transform_indices = @transform_1, window_bounds = array<i64: 16, 32>}, {transform_indices = @transform_2, window_bounds = array<i64: 16, 32>}, {transform_indices = @transform_3, window_bounds = array<i64: 16, 32>}]} {
    %c0_i32 = arith.constant 0 : i32
    %0 = arith.cmpi eq, %arg1, %c0_i32 : i32
    %1 = arith.extui %0 : i1 to i32
    %c0_i32_0 = arith.constant 0 : i32
    %2 = arith.cmpi ne, %1, %c0_i32_0 : i32
    scf.if %2 {
      %c0_10 = arith.constant 0 : index
      %c0_11 = arith.constant 0 : index
      %12 = vector.load %arg4[%c0_10, %c0_11] : memref<16x32xf32, #tpu.memory_space<vmem>>, vector<16x32xf32>
      %c0_12 = arith.constant 0 : index
      %c0_13 = arith.constant 0 : index
      %13 = vector.load %arg6[%c0_12, %c0_13] : memref<16x32xf32, #tpu.memory_space<vmem>>, vector<16x32xf32>
      tpu.vector_store %arg6[%c0_12, %c0_13], %12 {strides = array<i32>} : memref<16x32xf32, #tpu.memory_space<vmem>>, vector<16x32xf32>,
    } else {
    }
    %c0 = arith.constant 0 : index
    %c0_1 = arith.constant 0 : index
    %3 = vector.load %arg6[%c0, %c0_1] : memref<16x32xf32, #tpu.memory_space<vmem>>, vector<16x32xf32>
    %c0_2 = arith.constant 0 : index
    %c0_3 = arith.constant 0 : index
    %4 = vector.load %arg2[%c0_2, %c0_3] : memref<16x16xbf16, #tpu.memory_space<vmem>>, vector<16x16xbf16>
    %c0_4 = arith.constant 0 : index
    %c0_5 = arith.constant 0 : index
    %5 = vector.load %arg3[%c0_4, %c0_5] : memref<16x32xbf16, #tpu.memory_space<vmem>>, vector<16x32xbf16>
    %cst = arith.constant dense<0.000000e+00> : vector<16x32xf32>
    %6 = tpu.matmul %4, %5, %cst {dimension_numbers = #tpu.dot_dimension_numbers<[1], [0], [0], [1], [0, 0, 1, 1], [], []>} : vector<16x16xbf16>, vector<16x32xbf16>, vector<16x32xf32> -> vector<16x32xf32>
    %7 = arith.addf %3, %6 : vector<16x32xf32>
    %c0_6 = arith.constant 0 : index
    %c0_7 = arith.constant 0 : index
    %8 = vector.load %arg6[%c0_6, %c0_7] : memref<16x32xf32, #tpu.memory_space<vmem>>, vector<16x32xf32>
    tpu.vector_store %arg6[%c0_6, %c0_7], %7 {strides = array<i32>} : memref<16x32xf32, #tpu.memory_space<vmem>>, vector<16x32xf32>,
    %c0_i32_8 = arith.constant 0 : i32
    %9 = arith.cmpi eq, %arg1, %c0_i32_8 : i32
    %10 = arith.extui %9 : i1 to i32
    %c0_i32_9 = arith.constant 0 : i32
    %11 = arith.cmpi ne, %10, %c0_i32_9 : i32
    scf.if %11 {
      %c0_10 = arith.constant 0 : index
      %c0_11 = arith.constant 0 : index
      %12 = vector.load %arg6[%c0_10, %c0_11] : memref<16x32xf32, #tpu.memory_space<vmem>>, vector<16x32xf32>
      %cst_12 = arith.constant 0.000000e+00 : f32
      %13 = vector.broadcast %cst_12 : f32 to vector<16x32xf32>
      %14 = arith.maximumf %12, %13 : vector<16x32xf32>
      %15 = arith.mulf %14, %14 : vector<16x32xf32>
      %cst_13 = arith.constant dense<0.000000e+00> : vector<16xf32>
      %16 = vector.multi_reduction <add>, %15, %cst_13 [1] : vector<16x32xf32> to vector<16xf32>
      %17 = vector.shape_cast %16 : vector<16xf32> to vector<16x1xf32>
      %cst_14 = arith.constant 1.000000e-24 : f32
      %18 = vector.broadcast %cst_14 : f32 to vector<16x1xf32>
      %19 = arith.maximumf %17, %18 : vector<16x1xf32>
      %20 = math.rsqrt %19 : vector<16x1xf32>
      %21 = vector.broadcast %20 : vector<16x1xf32> to vector<16x32xf32>
      %22 = arith.mulf %14, %21 : vector<16x32xf32>
      %c0_15 = arith.constant 0 : index
      %c0_16 = arith.constant 0 : index
      %23 = vector.load %arg5[%c0_15, %c0_16] : memref<16x32xf32, #tpu.memory_space<vmem>>, vector<16x32xf32>
      tpu.vector_store %arg5[%c0_15, %c0_16], %22 {strides = array<i32>} : memref<16x32xf32, #tpu.memory_space<vmem>>, vector<16x32xf32>,
    } else {
    }
    return
  }
  func.func @transform_0(%arg0: i32, %arg1: i32) -> (i32, i32) {
    %c0_i32 = arith.constant 0 : i32
    return %arg0, %arg1 : i32, i32
  }
  func.func @transform_1(%arg0: i32, %arg1: i32) -> (i32, i32) {
    %c0_i32 = arith.constant 0 : i32
    %c0_i32_0 = arith.constant 0 : i32
    return %arg1, %c0_i32 : i32, i32
  }
  func.func @transform_2(%arg0: i32, %arg1: i32) -> (i32, i32) {
    %c0_i32 = arith.constant 0 : i32
    %c0_i32_0 = arith.constant 0 : i32
    return %arg0, %c0_i32 : i32, i32
  }
  func.func @transform_3(%arg0: i32, %arg1: i32) -> (i32, i32) {
    %c0_i32 = arith.constant 0 : i32
    %c0_i32_0 = arith.constant 0 : i32
    return %arg0, %c0_i32 : i32, i32
  }
}

module attributes {stable_mosaic.version = 11 : i64} {
  func.func @_xform_kernel(%arg0: i32, %arg1: memref<16x32xf32, #tpu.memory_space<vmem>>, %arg2: memref<32x64xf32, #tpu.memory_space<vmem>>, %arg3: memref<1x64xf32, #tpu.memory_space<vmem>>, %arg4: memref<16x32xbf16, #tpu.memory_space<vmem>>, %arg5: memref<16x32xf32, #tpu.memory_space<vmem>>) attributes {dimension_semantics = [#tpu.dimension_semantics<parallel>], iteration_bounds = array<i64: 1>, scalar_prefetch = 0 : i64, scratch_operands = 0 : i64, tpu.core_type = #tpu.core_type<tc>, window_params = [{transform_indices = @transform_0, window_bounds = array<i64: 16, 32>}, {pipeline_mode = #tpu.pipeline_mode<synchronous>, transform_indices = @transform_1, window_bounds = array<i64: 32, 64>}, {pipeline_mode = #tpu.pipeline_mode<synchronous>, transform_indices = @transform_2, window_bounds = array<i64: 1, 64>}, {transform_indices = @transform_3, window_bounds = array<i64: 16, 32>}, {transform_indices = @transform_4, window_bounds = array<i64: 16, 32>}]} {
    %c0 = arith.constant 0 : index
    %c0_0 = arith.constant 0 : index
    %0 = vector.load %arg1[%c0, %c0_0] : memref<16x32xf32, #tpu.memory_space<vmem>>, vector<16x32xf32>
    %cst = arith.constant 0.000000e+00 : f32
    %1 = vector.broadcast %cst : f32 to vector<16x32xf32>
    %2 = arith.maximumf %0, %1 : vector<16x32xf32>
    %c0_1 = arith.constant 0 : index
    %c0_2 = arith.constant 0 : index
    %3 = vector.load %arg2[%c0_1, %c0_2] : memref<32x64xf32, #tpu.memory_space<vmem>>, vector<32x64xf32>
    %cst_3 = arith.constant dense<0.000000e+00> : vector<16x64xf32>
    %4 = tpu.matmul %2, %3, %cst_3 {dimension_numbers = #tpu.dot_dimension_numbers<[1], [0], [0], [1], [0, 0, 1, 1], [], []>} : vector<16x32xf32>, vector<32x64xf32>, vector<16x64xf32> -> vector<16x64xf32>
    %c0_4 = arith.constant 0 : index
    %c0_5 = arith.constant 0 : index
    %5 = vector.load %arg3[%c0_4, %c0_5] : memref<1x64xf32, #tpu.memory_space<vmem>>, vector<1x64xf32>
    %6 = vector.broadcast %5 : vector<1x64xf32> to vector<16x64xf32>
    %7 = arith.addf %4, %6 : vector<16x64xf32>
    %8 = vector.extract_strided_slice %7 {offsets = [0, 0], sizes = [16, 32], strides = [1, 1]} : vector<16x64xf32> to vector<16x32xf32>
    %cst_6 = arith.constant 0.000000e+00 : f32
    %9 = vector.broadcast %cst_6 : f32 to vector<16x32xf32>
    %10 = arith.maximumf %8, %9 : vector<16x32xf32>
    %11 = arith.truncf %10 : vector<16x32xf32> to vector<16x32xbf16>
    %c0_7 = arith.constant 0 : index
    %c0_8 = arith.constant 0 : index
    %12 = vector.load %arg4[%c0_7, %c0_8] : memref<16x32xbf16, #tpu.memory_space<vmem>>, vector<16x32xbf16>
    tpu.vector_store %arg4[%c0_7, %c0_8], %11 {strides = array<i32>} : memref<16x32xbf16, #tpu.memory_space<vmem>>, vector<16x32xbf16>,
    %13 = vector.extract_strided_slice %7 {offsets = [0, 32], sizes = [16, 32], strides = [1, 1]} : vector<16x64xf32> to vector<16x32xf32>
    %c0_9 = arith.constant 0 : index
    %c0_10 = arith.constant 0 : index
    %14 = vector.load %arg5[%c0_9, %c0_10] : memref<16x32xf32, #tpu.memory_space<vmem>>, vector<16x32xf32>
    tpu.vector_store %arg5[%c0_9, %c0_10], %13 {strides = array<i32>} : memref<16x32xf32, #tpu.memory_space<vmem>>, vector<16x32xf32>,
    return
  }
  func.func @transform_0(%arg0: i32) -> (i32, i32) {
    %c0_i32 = arith.constant 0 : i32
    %c0_i32_0 = arith.constant 0 : i32
    return %arg0, %c0_i32 : i32, i32
  }
  func.func @transform_1(%arg0: i32) -> (i32, i32) {
    %c0_i32 = arith.constant 0 : i32
    %c0_i32_0 = arith.constant 0 : i32
    %c0_i32_1 = arith.constant 0 : i32
    return %c0_i32, %c0_i32_0 : i32, i32
  }
  func.func @transform_2(%arg0: i32) -> (i32, i32) {
    %c0_i32 = arith.constant 0 : i32
    %c0_i32_0 = arith.constant 0 : i32
    %c0_i32_1 = arith.constant 0 : i32
    return %c0_i32, %c0_i32_0 : i32, i32
  }
  func.func @transform_3(%arg0: i32) -> (i32, i32) {
    %c0_i32 = arith.constant 0 : i32
    %c0_i32_0 = arith.constant 0 : i32
    return %arg0, %c0_i32 : i32, i32
  }
  func.func @transform_4(%arg0: i32) -> (i32, i32) {
    %c0_i32 = arith.constant 0 : i32
    %c0_i32_0 = arith.constant 0 : i32
    return %arg0, %c0_i32 : i32, i32
  }
}

</mosaic_0001>

<bundles_post_ra>
// kernel: _lambda_.5
= control target key start
LH: loop header
LB: loop body
LE: loop exit
PB: predicated region body
PF: predicated region fallthrough
CT: control target
= control target key end

     0   :  { %vm26_vm0 = vcmask 64512   ;;  %vm118_vm1 = vcmask 257024   ;;  %vm129_vm2 = vcmask 261120   ;;  %s206_s1 = inlined_call_operand.vmem [shape: f32[8,64], index: 1, kind: input, shape index: {}]   ;;  %s207_s0 = inlined_call_operand.vmem [shape: f32[16,8], index: 0, kind: input, shape index: {}]   ;;  %s208_s2 = inlined_call_operand.vmem [shape: f32[1,64], index: 2, kind: input, shape index: {}]   ;;  %s209_s3 = inlined_call_operand.vmem [shape: bf16[16,32], index: 3, kind: output, shape index: {0}]   ;;  %s210_s4 = inlined_call_operand.vmem [shape: f32[16,32], index: 4, kind: output, shape index: {1}]  }
   0x1   :  { %v18_v0 = vld [vmem:[%s206_s1] sm:$0xff]  ;;  %v17_v2 = vld [vmem:[%s207_s0 + $0x8] sm:$0xff]  ;;  %s156_s1 = smov 96  }
   0x2   :  { %v16_v1 = vld [vmem:[%s207_s0] sm:$0xff]  ;;  %150 = vmatprep.subr.mxu0 %v18_v0 }
   0x3   :  { %152 = vmatprep.mubr.msk.f32.mxu0 %vm26_vm0, %v16_v1  ;;  %151 = vmatpush3.msra.mxu0 %v18_v0  ;;  %v140_v3 = vld [vmem:[%s208_s2] ss:$0 sm:$0xff] }
   0x4   :  { %153 = vmatmul.mubr.msk.f32.vlgmr.msra.gmra.mrb[0].mxu0 %vm26_vm0, %v17_v2 }
  0xd7   :  { %v154_v4 = vpop.f32.mrb[0].mxu0 }
  0xd8   :  { %v105_v5 = vadd.f32 %v154_v4, %v140_v3  ;;  %v99_v6 = vpop.f32.mrb[1].mxu0 }
  0xd9   :  { %v100_v7 = vadd.f32 %v140_v3, %v99_v6 }
  0xda   :  { %v109_v8 = vmax.f32 %v105_v5, 0.0 }
  0xdb   :  { %v108_v9 = vmax.f32 %v100_v7, 0.0  ;;  %123 = vrot.lane.b32.xlu0 %v100_v7, %s156_s1 }
  0xdc   :  { %v146_v10 = vpack.c.bf16 %v109_v8, %v109_v8 }
  0xdd   :  { %v145_v11 = vpack.c.bf16 %v108_v9, %v108_v9 }
  0xde   :  { %120 = vst.msk [vmem:[%s209_s3 + $0x4] sm:$0xf] %vm118_vm1, %v146_v10 }
  0xdf   :  { %119 = vst.msk [vmem:[%s209_s3] sm:$0xf] %vm118_vm1, %v145_v11  ;;  %125 = vrot.lane.b32.xlu0 %v105_v5, %s156_s1 }
 0x14d   :  { %v124_v12 = vpop.permute.xlu0 %123 }
 0x14e   :  { %130 = vst.msk [vmem:[%s210_s4] sm:$0xff] %vm129_vm2, %v124_v12 }
 0x151   :  { %v126_v13 = vpop.permute.xlu0 %125 }
 0x152   :  { %131 = vst.msk [vmem:[%s210_s4 + $0x8] sm:$0xff] %vm129_vm2, %v126_v13 }

// kernel: _lambda_.9
= control target key start
LH: loop header
LB: loop body
LE: loop exit
PB: predicated region body
PF: predicated region fallthrough
CT: control target
= control target key end

     0   :  { %vm35_vm0 = vcmask 261120   ;;  %s375_s1 = inlined_call_operand.vmem [shape: f32[32,32], index: 1, kind: input, shape index: {}]   ;;  %s376_s0 = inlined_call_operand.vmem [shape: f32[16,32], index: 0, kind: input, shape index: {}]   ;;  %s377_s3 = inlined_call_operand.vmem [shape: f32[32,128], index: 3, kind: input, shape index: {}]   ;;  %s378_s2 = inlined_call_operand.vmem [shape: f32[1,32], index: 2, kind: input, shape index: {}]   ;;  %s379_s4 = inlined_call_operand.vmem [shape: f32[1,128], index: 4, kind: input, shape index: {}]   ;;  %s380_s5 = inlined_call_operand.vmem [shape: f32[16,128], index: 5, kind: output, shape index: {}]  }
   0x1   :  { %v24_v0 = vld [vmem:[%s375_s1] sm:$0xff]  ;;  %v25_v1 = vld [vmem:[%s375_s1 + $0x8] sm:$0xff]  ;;  %v26_v2 = vld [vmem:[%s375_s1 + $0x10] sm:$0xff] }
   0x2   :  { %v275_v3 = vpack.c.bf16 %v25_v1, %v24_v0  ;;  %v27_v4 = vld [vmem:[%s375_s1 + $0x18] sm:$0xff]  ;;  %v20_v5 = vld [vmem:[%s376_s0] sm:$0xff]  ;;  %v118_v9 = vld [vmem:[%s377_s3 + $0x8] sm:$0xff] }
   0x3   :  { %v279_v6 = vpack.c.bf16 %v27_v4, %v26_v2  ;;  %v22_v7 = vmax.f32 %v20_v5, 0.0  ;;  %v117_v8 = vld [vmem:[%s377_s3] sm:$0xff]  ;;  %v21_v11 = vld [vmem:[%s376_s0 + $0x8] sm:$0xff]  ;;  %v119_v13 = vld [vmem:[%s377_s3 + $0x10] sm:$0xff] }
   0x4   :  { %276 = vmatprep.subr.bf16.mxu0 %v275_v3  ;;  %v283_v10 = vpack.c.bf16 %v118_v9, %v117_v8  ;;  %v23_v12 = vmax.f32 %v21_v11, 0.0  ;;  %v120_v14 = vld [vmem:[%s377_s3 + $0x18] sm:$0xff]  ;;  %v235_v16 = vld [vmem:[%s378_s2] ss:$0 sm:$0xff] }
   0x5   :  { %278 = vmatpush3.bf16.msra.mxu0 %v275_v3  ;;  %261 = vmatprep.mubr.msk.f32.mxu0 %vm35_vm0, %v22_v7  ;;  %v287_v15 = vpack.c.bf16 %v120_v14, %v119_v13  ;;  %v238_v21 = vld [vmem:[%s379_s4] ss:$0 sm:$0xff] }
   0x6   :  { %280 = vmatprep.subr.bf16.mxu0 %v279_v6  ;;  %284 = vmatprep.subr.bf16.mxu1 %v283_v10 }
   0x7   :  { %286 = vmatpush3.bf16.msra.mxu1 %v283_v10 }
   0x8   :  { %288 = vmatprep.subr.bf16.mxu1 %v287_v15 }
   0x9   :  { %282 = vmatpush3.bf16.msra.mxu0 %v279_v6 }
   0xb   :  { %290 = vmatpush3.bf16.msra.mxu1 %v287_v15 }
   0xc   :  { %262 = vmatmul.mubr.msk.f32.vlgmr.msra.gmra.mrb[0].mxu0 %vm35_vm0, %v23_v12 }
  0xdf   :  { %v263_v17 = vpop.f32.mrb[0].mxu0 }
  0xe0   :  { %v108_v18 = vpop.f32.mrb[1].mxu0  ;;  %v114_v20 = vadd.f32 %v263_v17, %v235_v16 }
  0xe1   :  { %v109_v19 = vadd.f32 %v235_v16, %v108_v18 }
  0xe3   :  { %272 = vmatprep.mubr.msk.f32.mxu1 %vm35_vm0, %v109_v19 }
  0xe4   :  { %273 = vmatmul.mubr.msk.f32.vlgmr.msra.gmra.mrb[0].mxu1 %vm35_vm0, %v114_v20 }
 0x1b7   :  { %v274_v22 = vpop.f32.mrb[0].mxu1 }
 0x1b8   :  { %v200_v23 = vpop.f32.mrb[1].mxu1  ;;  %v206_v25 = vadd.f32 %v274_v22, %v238_v21 }
 0x1b9   :  { %v201_v24 = vadd.f32 %v238_v21, %v200_v23 }
 0x1bb   :  { %209 = vmax.xlane.f32.xlu0 %v201_v24 }
 0x1bf   :  { %211 = vmax.xlane.f32.xlu0 %v206_v25 }
 0x248   :  { %v210_v26 = vpop.xlane.xlu0 %209 }
 0x249   :  { %v213_v27 = vsub.f32 %v201_v24, %v210_v26 }
 0x24b   :  { %v215_v28 = vmul.f32 1.442695, %v213_v27 }
 0x24c   :  { %v212_v29 = vpop.xlane.xlu0 %211 }
 0x24d   :  { %v214_v30 = vsub.f32 %v206_v25, %v212_v29  ;;  %291 = vpow2.f32 %v215_v28 }
 0x24f   :  { %v217_v31 = vmul.f32 1.442695, %v214_v30 }
 0x251   :  { %293 = vpow2.f32 %v217_v31 }
 0x257   :  { %v292_v32 = vpop.eup %291 }
 0x258   :  { %219 = vadd.xlane.f32.xlu1 %v292_v32 }
 0x25b   :  { %v294_v33 = vpop.eup %293 }
 0x25c   :  { %221 = vadd.xlane.f32.xlu1 %v294_v33 }
 0x2e5   :  { %v220_v34 = vpop.xlane.xlu1 %219 }
 0x2e6   :  { %295 = vlog2.f32 %v220_v34 }
 0x2e9   :  { %v222_v35 = vpop.xlane.xlu1 %221 }
 0x2ea   :  { %297 = vlog2.f32 %v222_v35 }
 0x2f0   :  { %v296_v36 = vpop.eup %295 }
 0x2f1   :  { %v224_v37 = vmul.f32 0.6931472, %v296_v36 }
 0x2f3   :  { %v227_v38 = vsub.f32 %v213_v27, %v224_v37 }
 0x2f4   :  { %v298_v39 = vpop.eup %297 }
 0x2f5   :  { %229 = vst [vmem:[%s380_s5] sm:$0xff] %v227_v38  ;;  %v226_v40 = vmul.f32 0.6931472, %v298_v39 }
 0x2f7   :  { %v228_v41 = vsub.f32 %v214_v30, %v226_v40 }
 0x2f9   :  { %230 = vst [vmem:[%s380_s5 + $0x8] sm:$0xff] %v228_v41 }

// kernel: _lambda_.6
= control target key start
LH: loop header
LB: loop body
LE: loop exit
PB: predicated region body
PF: predicated region fallthrough
CT: control target
= control target key end

     0   :  { %v137_v0 = vmov 0.0   ;;  %vm138_vm0 = vmmov 0   ;;  %vm21_vm1 = vcmask 261120   ;;  %vm41_vm2 = vcmask 130048   ;;  %s185_s1 = inlined_call_operand.vmem [shape: bf16[16,32], index: 1, kind: input, shape index: {}]   ;;  %s186_s0 = inlined_call_operand.vmem [shape: bf16[16,16], index: 0, kind: input, shape index: {}]   ;;  %s187_s2 = inlined_call_operand.vmem [shape: f32[16,32], index: 2, kind: input, shape index: {}]   ;;  %s188_s3 = inlined_call_operand.vmem [shape: f32[16,32], index: 3, kind: output, shape index: {}]  }
   0x1   :  { %123 = vmatprep.subr.bf16.mxu0 %v137_v0  ;;  %v131_v1 = vld [vmem:[%s185_s1] sm:$0xff]   ;;  %125 = vmatprep.mubr.msk.bf16.mxu0 %vm138_vm0, %v137_v0  ;;  %v20_v4 = vld [vmem:[%s187_s2 + $0x8] sm:$0xff] }
   0x2   :  { %v132_v2 = vld [vmem:[%s186_s0] sm:$0xff]   ;;  %124 = vmatpush3.bf16.msra.mxu0 %v131_v1  ;;  %23 = vst.msk [vmem:[#allocation2 + $0x8] sm:$0xff] %vm21_vm1, %v20_v4 }
   0x3   :  { %v19_v3 = vld [vmem:[%s187_s2] sm:$0xff] }
   0x4   :  { %22 = vst.msk [vmem:[#allocation2] sm:$0xff] %vm21_vm1, %v19_v3 }
   0x5   :  { %126 = vmatmul.mubr.msk.bf16.vlgmr.msra.gmra.mrb[0].mxu0 %vm41_vm2, %v132_v2 }
   0x9   :  { %v25_v7 = vld [vmem:[#allocation2 + $0x8] sm:$0xff] }
   0xb   :  { %v24_v5 = vld [vmem:[#allocation2] sm:$0xff] }
  0xd8   :  { %v79_v6 = vpop.f32.mrb[0].mxu0 }
  0xd9   :  { %v86_v8 = vadd.f32 %v79_v6, %v24_v5  ;;  %v127_v9 = vpop.f32.mrb[1].mxu0 }
  0xda   :  { %v82_v10 = vpop.f32.mrb[2].mxu0 }
  0xdb   :  { %89 = vst.msk [vmem:[#allocation2] sm:$0xff] %vm21_vm1, %v86_v8  ;;  %v87_v11 = vadd.f32 %v82_v10, %v25_v7  ;;  %v128_v12 = vpop.f32.mrb[3].mxu0 }
  0xdd   :  { %90 = vst.msk [vmem:[#allocation2 + $0x8] sm:$0xff] %vm21_vm1, %v87_v11 }
  0xe2   :  { %v94_v13 = vld [vmem:[#allocation2] sm:$0xff] }
  0xe3   :  { %v96_v14 = vmax.f32 %v94_v13, 0.0 }
  0xe4   :  { %v95_v15 = vld [vmem:[#allocation2 + $0x8] sm:$0xff] }
  0xe5   :  { %v98_v16 = vmul.f32 %v96_v14, %v96_v14  ;;  %v97_v17 = vmax.f32 %v95_v15, 0.0 }
  0xe7   :  { %v100_v18 = vsel %vm21_vm1, %v98_v16, 0.0  ;;  %v99_v19 = vmul.f32 %v97_v17, %v97_v17 }
  0xe8   :  { %101 = vadd.xlane.f32.xlu0 %v100_v18 }
  0xe9   :  { %v103_v20 = vsel %vm21_vm1, %v99_v19, 0.0 }
  0xec   :  { %104 = vadd.xlane.f32.xlu0 %v103_v20 }
 0x175   :  { %v102_v21 = vpop.xlane.xlu0 %101 }
 0x176   :  { %v106_v22 = vmax.f32 %v102_v21, 1e-24 }
 0x178   :  { %133 = vrsqrt.f32 %v106_v22 }
 0x179   :  { %v105_v23 = vpop.xlane.xlu0 %104 }
 0x17a   :  { %v107_v24 = vmax.f32 %v105_v23, 1e-24 }
 0x17c   :  { %135 = vrsqrt.f32 %v107_v24 }
 0x182   :  { %v134_v25 = vpop.eup %133 }
 0x183   :  { %v110_v26 = vmul.f32 %v134_v25, %v96_v14 }
 0x185   :  { %112 = vst.msk [vmem:[%s188_s3] sm:$0xff] %vm21_vm1, %v110_v26 }
 0x186   :  { %v136_v27 = vpop.eup %135 }
 0x187   :  { %v111_v28 = vmul.f32 %v136_v27, %v97_v17 }
 0x189   :  { %113 = vst.msk [vmem:[%s188_s3 + $0x8] sm:$0xff] %vm21_vm1, %v111_v28 }

// kernel: _lambda_.7
= control target key start
LH: loop header
LB: loop body
LE: loop exit
PB: predicated region body
PF: predicated region fallthrough
CT: control target
= control target key end

     0   :  { %vm31_vm0 = vcmask 261120   ;;  %vm123_vm1 = vcmask 257024   ;;  %s177_s28 = smov 96   ;;  %s240_s1 = inlined_call_operand.vmem [shape: f32[32,64], index: 1, kind: input, shape index: {}]   ;;  %s241_s0 = inlined_call_operand.vmem [shape: f32[16,32], index: 0, kind: input, shape index: {}]   ;;  %s242_s2 = inlined_call_operand.vmem [shape: f32[1,64], index: 2, kind: input, shape index: {}]   ;;  %s243_s3 = inlined_call_operand.vmem [shape: bf16[16,32], index: 3, kind: output, shape index: {0}]   ;;  %s244_s4 = inlined_call_operand.vmem [shape: f32[16,32], index: 4, kind: output, shape index: {1}]  }
   0x1   :  { %v20_v0 = vld [vmem:[%s240_s1] sm:$0xff]  ;;  %v21_v1 = vld [vmem:[%s240_s1 + $0x8] sm:$0xff]  ;;  %v22_v2 = vld [vmem:[%s240_s1 + $0x10] sm:$0xff] }
   0x2   :  { %v168_v3 = vpack.c.bf16 %v21_v1, %v20_v0  ;;  %v23_v4 = vld [vmem:[%s240_s1 + $0x18] sm:$0xff]  ;;  %v16_v5 = vld [vmem:[%s241_s0] sm:$0xff]  ;;  %v17_v8 = vld [vmem:[%s241_s0 + $0x8] sm:$0xff] }
   0x3   :  { %v172_v6 = vpack.c.bf16 %v23_v4, %v22_v2  ;;  %v18_v7 = vmax.f32 %v16_v5, 0.0  ;;  %v19_v9 = vmax.f32 %v17_v8, 0.0  ;;  %v144_v10 = vld [vmem:[%s242_s2] ss:$0 sm:$0xff] }
   0x4   :  { %169 = vmatprep.subr.bf16.mxu0 %v168_v3 }
   0x5   :  { %171 = vmatpush3.bf16.msra.mxu0 %v168_v3  ;;  %165 = vmatprep.mubr.msk.f32.mxu0 %vm31_vm0, %v18_v7 }
   0x6   :  { %173 = vmatprep.subr.bf16.mxu0 %v172_v6 }
   0x9   :  { %175 = vmatpush3.bf16.msra.mxu0 %v172_v6 }
   0xc   :  { %166 = vmatmul.mubr.msk.f32.vlgmr.msra.gmra.mrb[0].mxu0 %vm31_vm0, %v19_v9 }
  0xdf   :  { %v167_v11 = vpop.f32.mrb[0].mxu0 }
  0xe0   :  { %v110_v12 = vadd.f32 %v167_v11, %v144_v10  ;;  %v104_v13 = vpop.f32.mrb[1].mxu0 }
  0xe1   :  { %v105_v14 = vadd.f32 %v144_v10, %v104_v13 }
  0xe2   :  { %v114_v15 = vmax.f32 %v110_v12, 0.0 }
  0xe3   :  { %v113_v16 = vmax.f32 %v105_v14, 0.0  ;;  %128 = vrot.lane.b32.xlu0 %v105_v14, %s177_s28 }
  0xe4   :  { %v150_v17 = vpack.c.bf16 %v114_v15, %v114_v15 }
  0xe5   :  { %v149_v18 = vpack.c.bf16 %v113_v16, %v113_v16 }
  0xe6   :  { %125 = vst.msk [vmem:[%s243_s3 + $0x4] sm:$0xf] %vm123_vm1, %v150_v17 }
  0xe7   :  { %124 = vst.msk [vmem:[%s243_s3] sm:$0xf] %vm123_vm1, %v149_v18  ;;  %130 = vrot.lane.b32.xlu0 %v110_v12, %s177_s28 }
 0x155   :  { %v129_v19 = vpop.permute.xlu0 %128 }
 0x156   :  { %134 = vst.msk [vmem:[%s244_s4] sm:$0xff] %vm31_vm0, %v129_v19 }
 0x159   :  { %v131_v20 = vpop.permute.xlu0 %130 }
 0x15a   :  { %135 = vst.msk [vmem:[%s244_s4 + $0x8] sm:$0xff] %vm31_vm0, %v131_v20 }

</bundles_post_ra>
